<compile_context>
chip_gen: v7x
topology: tpu7x:2x2x1
jax: 0.10.0
libtpu: 0.0.40
codegen_flags: <defaults>
</compile_context>

<pallas_src>
import functools
import math

import jax
import jax.numpy as jnp
from jax.experimental import pallas as pl
from jax.experimental.pallas import tpu as pltpu


def _round_up(x, m):
    return ((x + m - 1) // m) * m


def _roll(x, shift, axis):
    # Non-negative equivalent rotation (shift % size) to sidestep any
    # negative-shift edge cases; same result as jnp.roll semantics.
    return pltpu.roll(x, shift % x.shape[axis], axis)


def _mgsdt_kernel(phi_ref, mask_ref, out_ref, *, log_scale, eps_inner):
    p = phi_ref[...]        # (Hp, Wp) f32 - one batch element, padded
    mask = mask_ref[...]    # (Hp, Wp) f32 0/1 validity mask (resident across grid)

    # Neighbour views via XLU rolls on the full (8,128)-aligned slab.  The
    # wrapped rows/columns land outside the validity mask, so no extra masking
    # is needed and all intermediates keep the aligned (Hp, Wp) shape.
    left = _roll(p, 1, 1)     # p[i, j-1]
    right = _roll(p, -1, 1)   # p[i, j+1]
    up = _roll(p, 1, 0)       # p[i-1, j]
    down = _roll(p, -1, 0)    # p[i+1, j]

    # Separable 3x3 (valid) min/max pooling for zero-crossing detection.
    rmax = jnp.maximum(jnp.maximum(left, p), right)
    rmin = jnp.minimum(jnp.minimum(left, p), right)
    wmax = jnp.maximum(jnp.maximum(_roll(rmax, 1, 0), rmax), _roll(rmax, -1, 0))
    wmin = jnp.minimum(jnp.minimum(_roll(rmin, 1, 0), rmin), _roll(rmin, -1, 0))
    # "not a zero crossing": whole 3x3 window is >= 0 or <= 0 (no product, no
    # overflow, equivalent to !(wmax*wmin < 0) since wmin <= wmax).
    not_crossing = jnp.logical_or(wmin >= 0.0, wmax <= 0.0)

    # Unscaled central differences; the 0.5/vox_width factor is folded into
    # log_scale (sign of dx/dy is irrelevant: only squares are used).
    dx = right - left
    dy = down - up
    g2 = dx * dx + dy * dy + eps_inner
    # == log(sqrt(scale^2*(dx^2+dy^2) + eps))^2  with scale = 0.5/vox_width
    sqlog = (0.5 * jnp.log(g2) + log_scale) ** 2

    keep = jnp.where(not_crossing, mask, 0.0)   # f32 0/1

    # Lane-dense packed partial sums: row 0 = numerator, row 1 = denominator.
    # Only a sublane-axis reduce here; the cross-lane/cross-batch sum is a
    # single XLA reduce in the wrapper.
    out_ref[0:1, :] = jnp.sum(keep * sqlog, axis=0, keepdims=True)
    out_ref[1:2, :] = jnp.sum(keep, axis=0, keepdims=True)


def magnitude_gradient_sdt_loss(phi_nchw, vox_width, eps=1e-8):
    n, c, h, w = phi_nchw.shape
    assert c == 1, "MagnitudeGradientSDTLoss expects a single-channel field"
    assert h >= 3 and w >= 3, "valid 3x3 conv needs spatial dims >= 3"
    phi = phi_nchw.reshape(n, h, w).astype(jnp.float32)

    # Lane/sublane-dense layout: H -> multiple of 8, W -> multiple of 128.
    hp = max(_round_up(h, 8), 8)
    wp = max(_round_up(w, 128), 128)
    phi = jnp.pad(phi, ((0, 0), (0, hp - h), (0, wp - w)))

    # Loop-invariant validity mask, built once and kept resident in VMEM across
    # the whole grid (constant index_map).  Valid 3x3 conv centers are
    # 1 <= i <= h-2, 1 <= j <= w-2; this also excludes the padded rows/cols and
    # the roll-wrapped border rows/cols.
    rows = jnp.arange(hp)
    cols = jnp.arange(wp)
    row_ok = jnp.logical_and(rows >= 1, rows <= h - 2)
    col_ok = jnp.logical_and(cols >= 1, cols <= w - 2)
    mask = (row_ok[:, None] & col_ok[None, :]).astype(jnp.float32)   # (hp, wp)

    scale = 0.5 / float(vox_width)
    kernel = functools.partial(
        _mgsdt_kernel,
        log_scale=math.log(scale),
        eps_inner=float(eps) / (scale * scale),   # == eps * (2*vox_width)^2
    )

    img_bytes = hp * wp * 4
    # Double-buffered phi + resident mask + ~a dozen full-size temps; capped at
    # 64 MiB so the request is valid on v7x as well (see row-strip TODO above).
    vmem_limit = int(min(max(32 << 20, 24 * img_bytes), 64 << 20))

    out = pl.pallas_call(
        kernel,
        out_shape=jax.ShapeDtypeStruct((n, 2, wp), jnp.float32),
        grid_spec=pltpu.PrefetchScalarGridSpec(
            num_scalar_prefetch=0,
            grid=(n,),
            in_specs=[
                pl.BlockSpec((None, hp, wp), lambda i: (i, 0, 0)),   # phi, batch squeezed
                pl.BlockSpec((hp, wp), lambda i: (0, 0)),            # resident mask
            ],
            out_specs=pl.BlockSpec((None, 2, wp), lambda i: (i, 0, 0)),
        ),
        compiler_params=pltpu.CompilerParams(
            dimension_semantics=("parallel",),
            vmem_limit_bytes=vmem_limit,
        ),
    )(phi, mask)

    num = jnp.sum(out[:, 0, :])
    den = jnp.sum(out[:, 1, :])
    return num / (den + eps)


def _reference(phi_nchw, vox_width, eps=1e-8):
    """Pure-JAX reference of the original forward pass (for validation)."""
    p = phi_nchw[:, 0].astype(jnp.float32)
    h, w = p.shape[1], p.shape[2]
    scale = 0.5 / vox_width
    ddx = (p[:, 1:h - 1, 2:w] - p[:, 1:h - 1, 0:w - 2]) * scale
    ddy = (p[:, 2:h, 1:w - 1] - p[:, 0:h - 2, 1:w - 1]) * scale
    mag = jnp.sqrt(ddx * ddx + ddy * ddy + eps)
    sqlog = jnp.log(mag) ** 2
    wmax = None
    wmin = None
    for di in range(3):
        for dj in range(3):
            s = p[:, di:di + h - 2, dj:dj + w - 2]
            wmax = s if wmax is None else jnp.maximum(wmax, s)
            wmin = s if wmin is None else jnp.minimum(wmin, s)
    not_crossing = jnp.logical_not((wmax * wmin) < 0).astype(jnp.float32)
    return jnp.sum(not_crossing * sqlog) / (jnp.sum(not_crossing) + eps)


if __name__ == "__main__":
    key = jax.random.PRNGKey(0)
    # small, module-consistent shape: batch=2, channels=1, spatial=16x16
    phi = jax.random.normal(key, (2, 1, 16, 16), dtype=jnp.float32)
    vox_width = 0.61

    loss_fn = jax.jit(lambda x: magnitude_gradient_sdt_loss(x, vox_width))
    loss = jax.block_until_ready(loss_fn(phi))

    ref = jax.block_until_ready(_reference(phi, vox_width))
    assert jnp.allclose(loss, ref, rtol=1e-3, atol=1e-6), (float(loss), float(ref))

    print("KERNEL_OK")
</pallas_src>

<mosaic_0001>
module attributes {stable_mosaic.version = 11 : i64} {
  func.func @_mgsdt_kernel(%arg0: i32, %arg1: memref<1x16x128xf32, #tpu.memory_space<vmem>>, %arg2: memref<16x128xf32, #tpu.memory_space<vmem>>, %arg3: memref<1x2x128xf32, #tpu.memory_space<vmem>>) attributes {dimension_semantics = [#tpu.dimension_semantics<parallel>], iteration_bounds = array<i64: 2>, scalar_prefetch = 0 : i64, scratch_operands = 0 : i64, tpu.core_type = #tpu.core_type<tc>, window_params = [{transform_indices = @transform_0, window_bounds = array<i64: 1, 16, 128>}, {pipeline_mode = #tpu.pipeline_mode<synchronous>, transform_indices = @transform_1, window_bounds = array<i64: 16, 128>}, {transform_indices = @transform_2, window_bounds = array<i64: 1, 2, 128>}]} {
    %c0 = arith.constant 0 : index
    %c0_0 = arith.constant 0 : index
    %c0_1 = arith.constant 0 : index
    %0 = vector.load %arg1[%c0, %c0_0, %c0_1] : memref<1x16x128xf32, #tpu.memory_space<vmem>>, vector<1x16x128xf32>
    %1 = vector.shape_cast %0 : vector<1x16x128xf32> to vector<16x128xf32>
    %c0_2 = arith.constant 0 : index
    %c0_3 = arith.constant 0 : index
    %2 = vector.load %arg2[%c0_2, %c0_3] : memref<16x128xf32, #tpu.memory_space<vmem>>, vector<16x128xf32>
    %c1_i32 = arith.constant 1 : i32
    %3 = tpu.dynamic_rotate %1 by %c1_i32 dim 1 : vector<16x128xf32>, i32 -> vector<16x128xf32>
    %c127_i32 = arith.constant 127 : i32
    %4 = tpu.dynamic_rotate %1 by %c127_i32 dim 1 : vector<16x128xf32>, i32 -> vector<16x128xf32>
    %c1_i32_4 = arith.constant 1 : i32
    %5 = tpu.dynamic_rotate %1 by %c1_i32_4 dim 0 : vector<16x128xf32>, i32 -> vector<16x128xf32>
    %c15_i32 = arith.constant 15 : i32
    %6 = tpu.dynamic_rotate %1 by %c15_i32 dim 0 : vector<16x128xf32>, i32 -> vector<16x128xf32>
    %7 = arith.maximumf %3, %1 : vector<16x128xf32>
    %8 = arith.maximumf %7, %4 : vector<16x128xf32>
    %9 = arith.minimumf %3, %1 : vector<16x128xf32>
    %10 = arith.minimumf %9, %4 : vector<16x128xf32>
    %c1_i32_5 = arith.constant 1 : i32
    %11 = tpu.dynamic_rotate %8 by %c1_i32_5 dim 0 : vector<16x128xf32>, i32 -> vector<16x128xf32>
    %12 = arith.maximumf %11, %8 : vector<16x128xf32>
    %c15_i32_6 = arith.constant 15 : i32
    %13 = tpu.dynamic_rotate %8 by %c15_i32_6 dim 0 : vector<16x128xf32>, i32 -> vector<16x128xf32>
    %14 = arith.maximumf %12, %13 : vector<16x128xf32>
    %c1_i32_7 = arith.constant 1 : i32
    %15 = tpu.dynamic_rotate %10 by %c1_i32_7 dim 0 : vector<16x128xf32>, i32 -> vector<16x128xf32>
    %16 = arith.minimumf %15, %10 : vector<16x128xf32>
    %c15_i32_8 = arith.constant 15 : i32
    %17 = tpu.dynamic_rotate %10 by %c15_i32_8 dim 0 : vector<16x128xf32>, i32 -> vector<16x128xf32>
    %18 = arith.minimumf %16, %17 : vector<16x128xf32>
    %cst = arith.constant 0.000000e+00 : f32
    %19 = vector.broadcast %cst : f32 to vector<16x128xf32>
    %20 = arith.cmpf oge, %18, %19 : vector<16x128xf32>
    %cst_9 = arith.constant 0.000000e+00 : f32
    %21 = vector.broadcast %cst_9 : f32 to vector<16x128xf32>
    %22 = arith.cmpf ole, %14, %21 : vector<16x128xf32>
    %23 = arith.ori %20, %22 : vector<16x128xi1>
    %24 = arith.subf %4, %3 : vector<16x128xf32>
    %25 = arith.subf %6, %5 : vector<16x128xf32>
    %26 = arith.mulf %24, %24 : vector<16x128xf32>
    %27 = arith.mulf %25, %25 : vector<16x128xf32>
    %28 = arith.addf %26, %27 : vector<16x128xf32>
    %cst_10 = arith.constant 1.488400e-08 : f32
    %29 = vector.broadcast %cst_10 : f32 to vector<16x128xf32>
    %30 = arith.addf %28, %29 : vector<16x128xf32>
    %31 = math.log %30 : vector<16x128xf32>
    %cst_11 = arith.constant 5.000000e-01 : f32
    %32 = vector.broadcast %cst_11 : f32 to vector<16x128xf32>
    %33 = arith.mulf %32, %31 : vector<16x128xf32>
    %cst_12 = arith.constant -0.198850855 : f32
    %34 = vector.broadcast %cst_12 : f32 to vector<16x128xf32>
    %35 = arith.addf %33, %34 : vector<16x128xf32>
    %36 = arith.mulf %35, %35 : vector<16x128xf32>
    %cst_13 = arith.constant 0.000000e+00 : f32
    %37 = vector.broadcast %cst_13 : f32 to vector<16x128xf32>
    %38 = arith.select %23, %2, %37 : vector<16x128xi1>, vector<16x128xf32>
    %39 = arith.mulf %38, %36 : vector<16x128xf32>
    %cst_14 = arith.constant dense<0.000000e+00> : vector<128xf32>
    %40 = vector.multi_reduction <add>, %39, %cst_14 [0] : vector<16x128xf32> to vector<128xf32>
    %41 = vector.shape_cast %40 : vector<128xf32> to vector<1x128xf32>
    %c0_15 = arith.constant 0 : index
    %c0_16 = arith.constant 0 : index
    %c0_17 = arith.constant 0 : index
    %42 = vector.load %arg3[%c0_15, %c0_16, %c0_17] : memref<1x2x128xf32, #tpu.memory_space<vmem>>, vector<1x1x128xf32>
    %43 = vector.shape_cast %42 : vector<1x1x128xf32> to vector<1x128xf32>
    %44 = vector.shape_cast %41 : vector<1x128xf32> to vector<1x1x128xf32>
    tpu.vector_store %arg3[%c0_15, %c0_16, %c0_17], %44 {strides = array<i32>} : memref<1x2x128xf32, #tpu.memory_space<vmem>>, vector<1x1x128xf32>,
    %cst_18 = arith.constant dense<0.000000e+00> : vector<128xf32>
    %45 = vector.multi_reduction <add>, %38, %cst_18 [0] : vector<16x128xf32> to vector<128xf32>
    %46 = vector.shape_cast %45 : vector<128xf32> to vector<1x128xf32>
    %c0_19 = arith.constant 0 : index
    %c1 = arith.constant 1 : index
    %c0_20 = arith.constant 0 : index
    %47 = vector.load %arg3[%c0_19, %c1, %c0_20] : memref<1x2x128xf32, #tpu.memory_space<vmem>>, vector<1x1x128xf32>
    %48 = vector.shape_cast %47 : vector<1x1x128xf32> to vector<1x128xf32>
    %49 = vector.shape_cast %46 : vector<1x128xf32> to vector<1x1x128xf32>
    tpu.vector_store %arg3[%c0_19, %c1, %c0_20], %49 {strides = array<i32>} : memref<1x2x128xf32, #tpu.memory_space<vmem>>, vector<1x1x128xf32>,
    return
  }
  func.func @transform_0(%arg0: i32) -> (i32, i32, i32) {
    %c0_i32 = arith.constant 0 : i32
    %c0_i32_0 = arith.constant 0 : i32
    %c0_i32_1 = arith.constant 0 : i32
    return %arg0, %c0_i32, %c0_i32_0 : i32, i32, i32
  }
  func.func @transform_1(%arg0: i32) -> (i32, i32) {
    %c0_i32 = arith.constant 0 : i32
    %c0_i32_0 = arith.constant 0 : i32
    %c0_i32_1 = arith.constant 0 : i32
    return %c0_i32, %c0_i32_0 : i32, i32
  }
  func.func @transform_2(%arg0: i32) -> (i32, i32, i32) {
    %c0_i32 = arith.constant 0 : i32
    %c0_i32_0 = arith.constant 0 : i32
    %c0_i32_1 = arith.constant 0 : i32
    return %arg0, %c0_i32, %c0_i32_0 : i32, i32, i32
  }
}

</mosaic_0001>

<bundles_post_ra>
// kernel: _lambda_.1
= control target key start
LH: loop header
LB: loop body
LE: loop exit
PB: predicated region body
PF: predicated region fallthrough
CT: control target
= control target key end

     0   :  { %s349_s9 = smov 0   ;;  %s388_s0 = inlined_call_operand.vmem [shape: f32[2,16,128], index: 0, kind: input, shape index: {}]   ;;  %s389_s1 = inlined_call_operand.vmem [shape: f32[16,128], index: 1, kind: input, shape index: {}]   ;;  %s390_s2 = inlined_call_operand.vmem [shape: f32[2,2,128], index: 2, kind: output, shape index: {}]  }
   0x1 LB: > { %s299_s10 = sadd.s32 4294967295, %s330_s9   ;;  %p303_p0 = scmp.ge.s32.totalorder %s330_s9, 1  ;;  %s330_s9 = sphi %s349_s9, %s12_s9  }
   0x2   : > { %p112_p1 = scmp.lt.s32.totalorder %s330_s9, 3 }
   0x4   : > { %p113_p2 = pnand %p303_p0, %p112_p1 }
   0x5   : > { %p133_p3 = scmp.lt.s32.totalorder (!%p113_p2), %s299_s10, 1  ;;  %s332_s15 = smov (!%p113_p2), 127   ;;  %v156_v2 = vlaneseq (!%p113_p2)  ;;  %v144_v60 = vld [vmem:[%s389_s1] sm:$0xff] (!%p113_p2)  ;;  %v145_v61 = vld [vmem:[%s389_s1 + $0x8] sm:$0xff] (!%p113_p2) }
   0x6   : > { %116 = sbr.rel (%p113_p2) target bundleno = 183 (0xb7), region = 28  ;;  %s333_s16 = smov (!%p113_p2), 1  }
   0x7   : > { %v157_v3 = vshrl.u32 (!%p113_p2), %v156_v2, 7 }
   0x9   : > { %vm158_vm0 = vcmp.lt.s32.totalorder (!%p113_p2), %v157_v3, 1  ;;  %vm163_vm1 = vcmp.lt.s32.totalorder (!%p113_p2), %v157_v3, 7 }
   0xd   : > { %s392_s10 = smov (!%p133_p3, %s299_s10), 1 }
   0xe   : > { %s309_s11 = sshll.u32 %s392_s10, 4  ;;  %s306_s21 = sshll.u32 %s392_s10, 1 }
   0xf   : > { %s137_s14 = scalar_lea.vmem %s388_s0, %s309_s11  ;;  %s141_s24 = scalar_lea.vmem %s390_s2, %s306_s21 }
  0x10   : > { %v142_v0 = vld [vmem:[%s137_s14] sm:$0xff]  ;;  %v143_v1 = vld [vmem:[%s137_s14 + $0x8] sm:$0xff] }
  0x11   : > { %150 = vrot.lane.b32.xlu1 %v142_v0, %s332_s15  ;;  %146 = vrot.lane.b32.xlu0 %v142_v0, %s333_s16  ;;  %v155_v4 = vrot.slane %v143_v1, 7  ;;  %v162_v5 = vrot.slane %v143_v1, 1  ;;  %v154_v6 = vrot.slane %v142_v0, 7  ;;  %v161_v7 = vrot.slane %v142_v0, 1 }
  0x13   : > { %v160_v8 = vsel %vm158_vm0, %v155_v4, %v154_v6  ;;  %v164_v9 = vsel %vm163_vm1, %v161_v7, %v162_v5  ;;  %v159_v13 = vsel %vm158_vm0, %v154_v6, %v155_v4  ;;  %v165_v14 = vsel %vm163_vm1, %v162_v5, %v161_v7 }
  0x14   : > { %v206_v10 = vsub.f32 %v164_v9, %v160_v8  ;;  %v207_v20 = vsub.f32 %v165_v14, %v159_v13 }
  0x15   : > { %152 = vrot.lane.b32.xlu1 %v143_v1, %s332_s15  ;;  %148 = vrot.lane.b32.xlu0 %v143_v1, %s333_s16 }
  0x16   : > { %v210_v17 = vmul.f32 %v206_v10, %v206_v10  ;;  %v211_v29 = vmul.f32 %v207_v20, %v207_v20 }
  0x83   : > { %v151_v11 = vpop.permute.xlu1 %150  ;;  %v147_v12 = vpop.permute.xlu0 %146 }
  0x84   : > { %v166_v15 = vmax.f32 %v147_v12, %v142_v0  ;;  %v204_v16 = vsub.f32 %v151_v11, %v147_v12  ;;  %v170_v18 = vmin.f32 %v147_v12, %v142_v0 }
  0x86   : > { %v208_v19 = vmul.f32 %v204_v16, %v204_v16  ;;  %v168_v23 = vmax.f32 %v166_v15, %v151_v11  ;;  %v172_v28 = vmin.f32 %v170_v18, %v151_v11 }
  0x87   : > { %v153_v21 = vpop.permute.xlu1 %152  ;;  %v149_v22 = vpop.permute.xlu0 %148 }
  0x88   : > { %v212_v24 = vadd.f32 %v210_v17, %v208_v19  ;;  %v167_v25 = vmax.f32 %v149_v22, %v143_v1  ;;  %v171_v26 = vmin.f32 %v149_v22, %v143_v1  ;;  %v205_v27 = vsub.f32 %v153_v21, %v149_v22 }
  0x89   : > { %v174_v34 = vrot.slane %v168_v23, 7  ;;  %v180_v35 = vrot.slane %v168_v23, 1  ;;  %v186_v39 = vrot.slane %v172_v28, 7  ;;  %v192_v42 = vrot.slane %v172_v28, 1 }
  0x8a   : > { %v214_v30 = vadd.f32 1.4884e-08, %v212_v24  ;;  %v169_v31 = vmax.f32 %v167_v25, %v153_v21  ;;  %v173_v32 = vmin.f32 %v171_v26, %v153_v21  ;;  %v209_v33 = vmul.f32 %v205_v27, %v205_v27 }
  0x8c   : > { %320 = vlog2.f32 %v214_v30  ;;  %v175_v36 = vrot.slane %v169_v31, 7  ;;  %v181_v37 = vrot.slane %v169_v31, 1  ;;  %v187_v38 = vrot.slane %v173_v32, 7 }
  0x8d   : > { %v193_v40 = vrot.slane %v173_v32, 1  ;;  %v213_v41 = vadd.f32 %v211_v29, %v209_v33 }
  0x8e   : > { %v176_v43 = vsel %vm158_vm0, %v174_v34, %v175_v36  ;;  %v177_v44 = vsel %vm158_vm0, %v175_v36, %v174_v34  ;;  %v182_v45 = vsel %vm163_vm1, %v180_v35, %v181_v37  ;;  %v188_v48 = vsel %vm158_vm0, %v186_v39, %v187_v38 }
  0x8f   : > { %v178_v46 = vmax.f32 %v177_v44, %v168_v23  ;;  %v179_v47 = vmax.f32 %v176_v43, %v169_v31  ;;  %v189_v49 = vsel %vm158_vm0, %v187_v38, %v186_v39  ;;  %v183_v50 = vsel %vm163_vm1, %v181_v37, %v180_v35 }
  0x90   : > { %v190_v51 = vmin.f32 %v189_v49, %v172_v28  ;;  %v191_v52 = vmin.f32 %v188_v48, %v173_v32  ;;  %v194_v53 = vsel %vm163_vm1, %v192_v42, %v193_v40  ;;  %v195_v56 = vsel %vm163_vm1, %v193_v40, %v192_v42 }
  0x91   : > { %v184_v54 = vmax.f32 %v178_v46, %v182_v45  ;;  %v185_v55 = vmax.f32 %v179_v47, %v183_v50  ;;  %v215_v57 = vadd.f32 1.4884e-08, %v213_v41 }
  0x92   : > { %v196_v58 = vmin.f32 %v190_v51, %v194_v53  ;;  %v197_v59 = vmin.f32 %v191_v52, %v195_v56 }
  0x93   : > { %vm200_vm2 = vcmp.le.f32.partialorder %v184_v54, 0.0  ;;  %vm201_vm3 = vcmp.le.f32.partialorder %v185_v55, 0.0  ;;  %322 = vlog2.f32 %v215_v57 }
  0x94   : > { %vm198_vm4 = vcmp.ge.f32.partialorder %v196_v58, 0.0  ;;  %vm199_vm5 = vcmp.ge.f32.partialorder %v197_v59, 0.0 }
  0x95   : > { %vm202_vm6 = vmor %vm198_vm4, %vm200_vm2 }
  0x96   : > { %v321_v62 = vpop.eup %320  ;;  %vm203_vm7 = vmor %vm199_vm5, %vm201_vm3  ;;  %v226_v63 = vsel %vm202_vm6, %v144_v60, 0.0 }
  0x97   : > { %v217_v0 = vmul.f32 0.6931472, %v321_v62  ;;  %v227_v1 = vsel %vm203_vm7, %v145_v61, 0.0 }
  0x98   : > { %v238_v2 = vadd.f32 %v227_v1, %v226_v63 }
  0x99   : > { %v220_v3 = vmul.f32 0.5, %v217_v0 }
  0x9a   : > { %v239_v4 = vrot.slane %v238_v2, 4 }
  0x9b   : > { %v222_v7 = vadd.f32 -0.19885086, %v220_v3 }
  0x9c   : > { %v240_v5 = vadd.f32 %v239_v4, %v238_v2 }
  0x9d   : > { %v323_v6 = vpop.eup %322  ;;  %v224_v12 = vmul.f32 %v222_v7, %v222_v7 }
  0x9e   : > { %v219_v8 = vmul.f32 0.6931472, %v323_v6  ;;  %v241_v9 = vrot.slane %v240_v5, 2 }
  0x9f   : > { %v228_v17 = vmul.f32 %v226_v63, %v224_v12 }
  0xa0   : > { %v221_v10 = vmul.f32 0.5, %v219_v8  ;;  %v242_v11 = vadd.f32 %v241_v9, %v240_v5 }
  0xa2   : > { %v223_v13 = vadd.f32 -0.19885086, %v221_v10  ;;  %v243_v14 = vrot.slane %v242_v11, 1 }
  0xa4   : > { %v225_v15 = vmul.f32 %v223_v13, %v223_v13  ;;  %v244_v16 = vadd.f32 %v243_v14, %v242_v11 }
  0xa6   : > { %v229_v18 = vmul.f32 %v227_v1, %v225_v15  ;;  %245 = vst [vmem:[%s141_s24 + $0x1] sm:$0x1] %v244_v16 }
  0xa8   : > { %v230_v19 = vadd.f32 %v229_v18, %v228_v17 }
  0xaa   : > { %v231_v20 = vrot.slane %v230_v19, 4 }
  0xac   : > { %v232_v21 = vadd.f32 %v231_v20, %v230_v19 }
  0xae   : > { %v233_v22 = vrot.slane %v232_v21, 2 }
  0xb0   : > { %v234_v23 = vadd.f32 %v233_v22, %v232_v21 }
  0xb2   : > { %v235_v24 = vrot.slane %v234_v23, 1 }
  0xb4   : > { %v236_v25 = vadd.f32 %v235_v24, %v234_v23 }
  0xb6   : > { %237 = vst [vmem:[%s141_s24] sm:$0x1] %v236_v25 }
  0xb7 PF: > { %s12_s9 = sadd.s32 1, %s330_s9  }
  0xb8   : > { %p9_p4 = scmp.ge.s32.totalorder %s12_s9, 4  }
  0xba   :  { %11 = sbr.rel (!%p9_p4) target bundleno = 1 (0x1), region = 58 }

</bundles_post_ra>
